<compile_context>
chip_gen: v6e
topology: v6e:2x2x1
jax: 0.10.0
libtpu: 0.0.40
codegen_flags: <defaults>
</compile_context>

<pallas_src>
import functools

import numpy as np
import jax
import jax.numpy as jnp
from jax.experimental import pallas as pl
from jax.experimental.pallas import tpu as pltpu

F32 = jnp.float32

# ----------------------------- small config (torch defaults scaled down) ----
N_BATCH = 2
HIDDEN_DIM = 32        # n_mfcc == n_mels == conformer dim   (512 in the module)
DIM_HEAD = 8           # (240 in the module)
HEADS = 4
N_FFT = 64             # (1023 in the module)
HOP = 32               # (260 in the module)
T_SPEC = 32            # frames in data['treated']
WAVE_LEN = T_SPEC * HOP
T_FRAMES = 1 + WAVE_LEN // HOP          # 33 MFCC frames (center=True)
T_PAD = 40                              # frames padded to a sublane multiple (rows >= 33 masked)
CONV_EXPANSION = 2
CONV_KERNEL = 31
FF_MULT = 4
TSC_CH = 16
TSC_K = 9
N_FREQS = N_FFT // 2 + 1
F_PAD = 64                              # freq bins padded 33 -> 64 (lane-aligned re|im concat)
SR = 16000

INNER = HEADS * DIM_HEAD
CINNER = HIDDEN_DIM * CONV_EXPANSION
FFM = HIDDEN_DIM * FF_MULT

assert N_FFT == 2 * HOP                 # required by the fused overlap-add in the iSTFT kernel
assert T_PAD % 8 == 0 and T_PAD >= T_SPEC + 2 and T_PAD >= T_FRAMES

# ----------------------------- in-kernel helpers -----------------------------


def _ln(x, g, b):
    mu = jnp.mean(x, axis=-1, keepdims=True)
    var = jnp.mean(jnp.square(x - mu), axis=-1, keepdims=True)
    return (x - mu) * jax.lax.rsqrt(var + 1e-5) * g + b


def _bn_rows_masked(x, g, b, rmask, count):
    # training-mode BatchNorm1d with padded rows excluded from the batch statistics
    xm = x * rmask
    mu = jnp.sum(xm, axis=0, keepdims=True) / count
    xc = x - mu
    var = jnp.sum(xc * xc * rmask, axis=0, keepdims=True) / count
    return xc * jax.lax.rsqrt(var + 1e-5) * g + b


def _silu(x):
    return x * jax.nn.sigmoid(x)


def _prelu(x):
    # TODO(synk): learnable PReLU slope of the real TSCNet is unknown; default 0.25 used.
    return jnp.where(x >= 0.0, x, 0.25 * x)


# ----------------------------- fused Pallas kernels --------------------------


@functools.lru_cache(maxsize=None)
def _istft_call(N):
    """torch.istft (rect window, center trim): [re|im] @ [CR;CI] + roll-based overlap-add."""
    T = T_SPEC

    def kern(ri_ref, wi_ref, o_ref):
        fr = jnp.dot(ri_ref[0], wi_ref[...], preferred_element_type=F32)   # (T, N_FFT)
        first = fr[:, :HOP]
        second = fr[:, HOP:]
        nxt = jnp.concatenate([first[1:, :], first[0:1, :]], axis=0)       # first[t+1]
        y = 0.5 * (nxt + second)
        rows = jax.lax.broadcasted_iota(jnp.int32, (T, 1), 0)
        y = jnp.where(rows == T - 1, second, y)                            # last segment: one frame
        o_ref[0] = y

    return pl.pallas_call(
        kern,
        out_shape=jax.ShapeDtypeStruct((N, T, HOP), F32),
        grid=(N,),
        in_specs=[pl.BlockSpec((1, T, 2 * F_PAD), lambda n: (n, 0, 0)),
                  pl.BlockSpec((2 * F_PAD, N_FFT), lambda n: (0, 0))],
        out_specs=pl.BlockSpec((1, T, HOP), lambda n: (n, 0, 0)),
        compiler_params=pltpu.CompilerParams(dimension_semantics=("parallel",)),
    )


@functools.lru_cache(maxsize=None)
def _mfcc_call(N):
    """frame (in-kernel from 32-sample chunks) -> |rDFT|^2 -> mel -> dB(top_db) -> DCT."""
    T = T_PAD

    def kern(ch_ref, w_ref, fb2_ref, dct_ref, o_ref):
        ch = ch_ref[0]                                              # (T, HOP)
        ch_next = jnp.concatenate([ch[1:, :], ch[0:1, :]], axis=0)  # chunk t+1
        frames = jnp.concatenate([ch, ch_next], axis=1)             # (T, N_FFT)
        spec = jnp.dot(frames, w_ref[...], preferred_element_type=F32)        # (T, 2*F_PAD)
        mel = jnp.dot(spec * spec, fb2_ref[...], preferred_element_type=F32)  # (T, n_mels)
        db = 10.0 * jnp.log10(jnp.maximum(mel, 1e-10))
        valid = jax.lax.broadcasted_iota(jnp.int32, (T, 1), 0) < T_FRAMES
        mx = jnp.max(jnp.where(valid, db, -1e30))                   # per-item top_db reference
        db = jnp.maximum(db, mx - 80.0)
        mfcc = jnp.dot(db, dct_ref[...], preferred_element_type=F32)
        o_ref[0] = jnp.where(valid, mfcc, 0.0)

    return pl.pallas_call(
        kern,
        out_shape=jax.ShapeDtypeStruct((N, T, HIDDEN_DIM), F32),
        grid=(N,),
        in_specs=[pl.BlockSpec((1, T, HOP), lambda n: (n, 0, 0)),
                  pl.BlockSpec((N_FFT, 2 * F_PAD), lambda n: (0, 0)),
                  pl.BlockSpec((2 * F_PAD, HIDDEN_DIM), lambda n: (0, 0)),
                  pl.BlockSpec((HIDDEN_DIM, HIDDEN_DIM), lambda n: (0, 0))],
        out_specs=pl.BlockSpec((1, T, HIDDEN_DIM), lambda n: (n, 0, 0)),
        compiler_params=pltpu.CompilerParams(dimension_semantics=("parallel",)),
    )


@functools.lru_cache(maxsize=None)
def _conformer_stack_call(N, n_blocks):
    """All ConformerBlocks fused into one kernel; grid over blocks, x resident in VMEM."""
    T = T_PAD
    M = N * T
    PACKW = N * CINNER                     # both batch items' conv channels packed on lanes
    DWROWS = 16 + T + 16                   # sublane-aligned pad offset 16
    scale = DIM_HEAD ** -0.5
    bn_count = float(N * T_FRAMES)

    def kern(x_ref, rmask_ref, kbias_ref,
             f1_lng, f1_lnb, f1_w1, f1_b1, f1_w2, f1_b2,
             a_lng, a_lnb, a_wqkv, a_wo, a_bo,
             c_lng, c_lnb, c_pw1w, c_pw1b, c_dww, c_dwb, c_bng, c_bnb, c_pw2w, c_pw2b,
             f2_lng, f2_lnb, f2_w1, f2_b1, f2_w2, f2_b2,
             p_lng, p_lnb,
             o_ref, xs, att_s, dwpad):
        blk = pl.program_id(0)

        @pl.when(blk == 0)
        def _():
            xs[...] = x_ref[...]

        rmask = rmask_ref[...]                       # (M, 1): 1 for valid frames
        kbias = kbias_ref[...]                       # (1, T): 0 valid, -1e30 padded keys
        x = xs[...]

        def ff(xin, lng, lnb, w1, b1, w2, b2):
            h = _ln(xin, lng[0], lnb[0])
            h = _silu(jnp.dot(h, w1[0], preferred_element_type=F32) + b1[0])
            return jnp.dot(h, w2[0], preferred_element_type=F32) + b2[0]

        x = x + 0.5 * ff(x, f1_lng, f1_lnb, f1_w1, f1_b1, f1_w2, f1_b2)

        # ---- self attention (single fused QKV dot; padded key positions masked) ----
        # TODO(synk): lucidrains ConformerBlock adds Shaw relative positional embeddings
        #             and dropout inside attention; plain scaled dot-product here.
        xn = _ln(x, a_lng[0], a_lnb[0])
        qkv = jnp.dot(xn, a_wqkv[0], preferred_element_type=F32)      # (M, 3*INNER)
        for n in range(N):
            rs = slice(n * T, (n + 1) * T)
            for h_i in range(HEADS):
                c0 = h_i * DIM_HEAD
                q = qkv[rs, c0:c0 + DIM_HEAD] * scale
                k = qkv[rs, INNER + c0:INNER + c0 + DIM_HEAD]
                v = qkv[rs, 2 * INNER + c0:2 * INNER + c0 + DIM_HEAD]
                s = jnp.einsum("td,sd->ts", q, k, preferred_element_type=F32) + kbias
                m = jnp.max(s, axis=-1, keepdims=True)
                e = jnp.exp(s - m)
                p = e * pl.reciprocal(jnp.sum(e, axis=-1, keepdims=True), approx=True)
                att_s[rs, c0:c0 + DIM_HEAD] = jnp.dot(p, v, preferred_element_type=F32)
        x = x + jnp.dot(att_s[...], a_wo[0], preferred_element_type=F32) + a_bo[0]

        # ---- convolution module (batch items packed side-by-side on the lane axis) ----
        hc = _ln(x, c_lng[0], c_lnb[0])
        hc = jnp.dot(hc, c_pw1w[0], preferred_element_type=F32) + c_pw1b[0]   # (M, 2*CINNER)
        hc = hc[:, :CINNER] * jax.nn.sigmoid(hc[:, CINNER:])                  # GLU
        hc = hc * rmask                                                       # zero padded frames
        dwpad[...] = jnp.zeros((DWROWS, PACKW), F32)
        for n in range(N):
            dwpad[16:16 + T, n * CINNER:(n + 1) * CINNER] = hc[n * T:(n + 1) * T, :]
        acc = jnp.zeros((T, PACKW), F32)
        for kk in range(CONV_KERNEL):
            acc = acc + dwpad[kk + 1:kk + 1 + T, :] * c_dww[0, kk:kk + 1, :]
        d = jnp.concatenate([acc[:, n * CINNER:(n + 1) * CINNER] for n in range(N)], axis=0)
        d = d + c_dwb[0]
        d = _bn_rows_masked(d, c_bng[0], c_bnb[0], rmask, bn_count)
        d = _silu(d)
        x = x + jnp.dot(d, c_pw2w[0], preferred_element_type=F32) + c_pw2b[0]

        x = x + 0.5 * ff(x, f2_lng, f2_lnb, f2_w1, f2_b1, f2_w2, f2_b2)
        x = _ln(x, p_lng[0], p_lnb[0])
        xs[...] = x
        o_ref[...] = x

    def wspec(shape):
        nd = len(shape)
        return pl.BlockSpec((1,) + tuple(shape[1:]),
                            lambda b, _nd=nd: (b,) + (0,) * (_nd - 1))

    def cspec(shape):
        nd = len(shape)
        return pl.BlockSpec(tuple(shape), lambda b, _nd=nd: (0,) * _nd)

    dim = HIDDEN_DIM
    w_shapes = [
        (n_blocks, 1, dim), (n_blocks, 1, dim), (n_blocks, dim, FFM), (n_blocks, 1, FFM),
        (n_blocks, FFM, dim), (n_blocks, 1, dim),
        (n_blocks, 1, dim), (n_blocks, 1, dim), (n_blocks, dim, 3 * INNER),
        (n_blocks, INNER, dim), (n_blocks, 1, dim),
        (n_blocks, 1, dim), (n_blocks, 1, dim), (n_blocks, dim, 2 * CINNER), (n_blocks, 1, 2 * CINNER),
        (n_blocks, CONV_KERNEL, PACKW), (n_blocks, 1, CINNER), (n_blocks, 1, CINNER), (n_blocks, 1, CINNER),
        (n_blocks, CINNER, dim), (n_blocks, 1, dim),
        (n_blocks, 1, dim), (n_blocks, 1, dim), (n_blocks, dim, FFM), (n_blocks, 1, FFM),
        (n_blocks, FFM, dim), (n_blocks, 1, dim),
        (n_blocks, 1, dim), (n_blocks, 1, dim),
    ]
    in_specs = [cspec((M, dim)), cspec((M, 1)), cspec((1, T))] + [wspec(s) for s in w_shapes]

    return pl.pallas_call(
        kern,
        out_shape=jax.ShapeDtypeStruct((M, dim), F32),
        grid=(n_blocks,),
        in_specs=in_specs,
        out_specs=cspec((M, dim)),
        scratch_shapes=[pltpu.VMEM((M, dim), F32),
                        pltpu.VMEM((M, INNER), F32),
                        pltpu.VMEM((DWROWS, PACKW), F32)],
        compiler_params=pltpu.CompilerParams(dimension_semantics=("arbitrary",)),
    )


@functools.lru_cache(maxsize=None)
def _head_call(N):
    """BatchNorm1d + Linear(.,2) + verbatim reshape/transpose pairing + sigmoid + Bernoulli."""
    T = T_PAD
    bn_count = float(N * T_FRAMES)

    def kern(x_ref, m_ref, g_ref, b_ref, wt_ref, pa_ref, pb_ref, u_ref,
             p0_ref, p1_ref, t_ref):
        xb = _bn_rows_masked(x_ref[...], g_ref[...], b_ref[...], m_ref[...], bn_count)
        # lgT[c, n*T + t] = logit for class c at frame t of item n  (no explicit transpose)
        lgT = jnp.einsum("kc,mc->km", wt_ref[...], xb, preferred_element_type=F32)   # (2, N*T)
        for n in range(N):
            blk = lgT[:, n * T:(n + 1) * T]                                          # (2, T)
            flat = jnp.concatenate([blk[0:1, :], blk[1:2, :]], axis=1)               # (1, 2T)
            a = jnp.dot(flat, pa_ref[...], preferred_element_type=F32)               # (1, T)
            bq = jnp.dot(flat, pb_ref[...], preferred_element_type=F32)
            p1 = jax.nn.sigmoid(bq - a)
            p0_ref[n:n + 1, :] = 1.0 - p1
            p1_ref[n:n + 1, :] = p1
            t_ref[n:n + 1, :] = (u_ref[n:n + 1, :] < p1).astype(F32)

    return pl.pallas_call(
        kern,
        out_shape=(jax.ShapeDtypeStruct((N, T), F32),
                   jax.ShapeDtypeStruct((N, T), F32),
                   jax.ShapeDtypeStruct((N, T), F32)),
    )


@functools.lru_cache(maxsize=None)
def _tsc_call(N, L):
    """TSCNet(t0)+TSCNet(t1) stand-ins + treatment mix; time on lanes, im2col matmuls."""
    # TODO(synk): the real CMGAN TSCNet (dilated-dense encoder, two-stage conformer,
    #             mask/complex decoders) source is not provided; small conv1d stack stand-in.
    K = TSC_K
    C2 = 2 * TSC_CH                     # both encoders' channels on the sublane axis
    PADL = 128                          # lane-tile-aligned zero pad on both sides
    HALF = K // 2

    def kern(wave_ref, gate_ref, w1_ref, b1_ref, w2_ref, b2_ref, w3_ref, b3_ref,
             o_ref, hpad, im2c):
        hpad[...] = jnp.zeros((C2, L + 2 * PADL), F32)
        hpad[0:1, PADL:PADL + L] = wave_ref[0]                          # (1, L) row
        # layer 1 (Cin=1): per-tap broadcast multiply-accumulate, both encoders at once
        h = jnp.zeros((C2, L), F32)
        for kk in range(K):
            h = h + w1_ref[:, kk:kk + 1] * hpad[0:1, PADL - HALF + kk:PADL - HALF + kk + L]
        h = _prelu(h + b1_ref[...])
        # layer 2: im2col in VMEM + one (C2, K*C2) @ (K*C2, L) matmul (block-diag weights)
        hpad[0:C2, PADL:PADL + L] = h
        for kk in range(K):
            im2c[kk * C2:(kk + 1) * C2, :] = hpad[:, PADL - HALF + kk:PADL - HALF + kk + L]
        h = _prelu(jnp.dot(w2_ref[...], im2c[...], preferred_element_type=F32) + b2_ref[...])
        # layer 3 (Cout=1 per encoder): same im2col trick, output (2, L)
        hpad[0:C2, PADL:PADL + L] = h
        for kk in range(K):
            im2c[kk * C2:(kk + 1) * C2, :] = hpad[:, PADL - HALF + kk:PADL - HALF + kk + L]
        e = jnp.dot(w3_ref[...], im2c[...], preferred_element_type=F32) + b3_ref[...]
        g = gate_ref[0]                                                 # (1, L)
        o_ref[0] = (1.0 - g) * e[0:1, :] + g * e[1:2, :]

    row = pl.BlockSpec((1, 1, L), lambda n: (n, 0, 0))

    def full(shape):
        nd = len(shape)
        return pl.BlockSpec(tuple(shape), lambda n, _nd=nd: (0,) * _nd)

    return pl.pallas_call(
        kern,
        out_shape=jax.ShapeDtypeStruct((N, 1, L), F32),
        grid=(N,),
        in_specs=[row, row,
                  full((C2, K)), full((C2, 1)),
                  full((C2, K * C2)), full((C2, 1)),
                  full((2, K * C2)), full((2, 1))],
        out_specs=row,
        scratch_shapes=[pltpu.VMEM((C2, L + 2 * PADL), F32),
                        pltpu.VMEM((K * C2, L), F32)],
        compiler_params=pltpu.CompilerParams(dimension_semantics=("parallel",)),
    )


# ----------------------------- DSP constant matrices (host glue) ------------


def _hann(n):
    return 0.5 - 0.5 * np.cos(2.0 * np.pi * np.arange(n) / n)


def _rdft_matrices(n_fft):
    n = np.arange(n_fft)[:, None]
    k = np.arange(N_FREQS)[None, :]
    ang = 2.0 * np.pi * n * k / n_fft
    return np.cos(ang), np.sin(ang)                         # (n_fft, N_FREQS)


def _irdft_matrices(n_fft):
    k = np.arange(N_FREQS)[:, None]
    n = np.arange(n_fft)[None, :]
    ang = 2.0 * np.pi * k * n / n_fft
    c = np.full((N_FREQS, 1), 2.0)
    c[0] = 1.0
    c[-1] = 1.0
    return c * np.cos(ang) / n_fft, -c * np.sin(ang) / n_fft  # (N_FREQS, n_fft)


def _hz_to_mel(f):
    return 2595.0 * np.log10(1.0 + f / 700.0)


def _mel_to_hz(m):
    return 700.0 * (10.0 ** (m / 2595.0) - 1.0)


def _mel_filterbank(n_freqs, n_mels, sr):
    all_freqs = np.linspace(0.0, sr / 2.0, n_freqs)
    m_pts = np.linspace(_hz_to_mel(0.0), _hz_to_mel(sr / 2.0), n_mels + 2)
    f_pts = _mel_to_hz(m_pts)
    f_diff = f_pts[1:] - f_pts[:-1]
    slopes = f_pts[None, :] - all_freqs[:, None]
    down = -slopes[:, :-2] / f_diff[:-1]
    up = slopes[:, 2:] / f_diff[1:]
    return np.maximum(0.0, np.minimum(down, up))             # (n_freqs, n_mels)


def _dct_matrix(n_mels, n_mfcc):
    n = np.arange(n_mels)[None, :]
    k = np.arange(n_mfcc)[:, None]
    dct = np.cos(np.pi / n_mels * (n + 0.5) * k)
    dct[0] *= 1.0 / np.sqrt(2.0)
    dct *= np.sqrt(2.0 / n_mels)
    return dct.T                                              # (n_mels, n_mfcc)


_hw = _hann(N_FFT)[:, None]
_cosm, _sinm = _rdft_matrices(N_FFT)
_wfull = np.zeros((N_FFT, 2 * F_PAD), np.float32)
_wfull[:, :N_FREQS] = _hw * _cosm
_wfull[:, F_PAD:F_PAD + N_FREQS] = _hw * _sinm
WFULL_J = jnp.asarray(_wfull, F32)                            # window + [cos | sin]

_fbm = _mel_filterbank(N_FREQS, HIDDEN_DIM, SR)
_fb2 = np.zeros((2 * F_PAD, HIDDEN_DIM), np.float32)
_fb2[:N_FREQS] = _fbm
_fb2[F_PAD:F_PAD + N_FREQS] = _fbm
FB2_J = jnp.asarray(_fb2, F32)                                # mel fb applied to re^2 and im^2

_crm, _cim = _irdft_matrices(N_FFT)
_wi = np.zeros((2 * F_PAD, N_FFT), np.float32)
_wi[:N_FREQS] = _crm
_wi[F_PAD:F_PAD + N_FREQS] = _cim
WI_J = jnp.asarray(_wi, F32)                                  # stacked [CR; CI]

DCT_J = jnp.asarray(_dct_matrix(HIDDEN_DIM, HIDDEN_DIM), F32)


@functools.lru_cache(maxsize=None)
def _build_masks(n):
    rmask = np.zeros((n * T_PAD, 1), np.float32)
    for i in range(n):
        rmask[i * T_PAD:i * T_PAD + T_FRAMES] = 1.0
    kbias = np.zeros((1, T_PAD), np.float32)
    kbias[0, T_FRAMES:] = -1e30
    pa = np.zeros((2 * T_PAD, T_PAD), np.float32)
    pb = np.zeros((2 * T_PAD, T_PAD), np.float32)
    for i in range(T_FRAMES):            # verbatim torch reshape(N,-1,2).transpose(1,2) pairing
        ca, ta = divmod(2 * i, T_FRAMES)
        cb, tb = divmod(2 * i + 1, T_FRAMES)
        pa[ca * T_PAD + ta, i] = 1.0
        pb[cb * T_PAD + tb, i] = 1.0
    return (jnp.asarray(rmask), jnp.asarray(kbias), jnp.asarray(pa), jnp.asarray(pb))


# ----------------------------- host-side weight packing ----------------------


def _pack_conformer(blocks, n):
    def stk(fn):
        return jnp.stack([fn(b) for b in blocks], axis=0)

    def vec(fn):
        return jnp.stack([fn(b).reshape(1, -1) for b in blocks], axis=0)

    return [
        vec(lambda b: b["ff1"]["ln_g"]), vec(lambda b: b["ff1"]["ln_b"]),
        stk(lambda b: b["ff1"]["w1"]), vec(lambda b: b["ff1"]["b1"]),
        stk(lambda b: b["ff1"]["w2"]), vec(lambda b: b["ff1"]["b2"]),
        vec(lambda b: b["attn"]["ln_g"]), vec(lambda b: b["attn"]["ln_b"]),
        stk(lambda b: jnp.concatenate([b["attn"]["wq"], b["attn"]["wkv"]], axis=1)),
        stk(lambda b: b["attn"]["wo"]), vec(lambda b: b["attn"]["bo"]),
        vec(lambda b: b["conv"]["ln_g"]), vec(lambda b: b["conv"]["ln_b"]),
        stk(lambda b: b["conv"]["pw1_w"]), vec(lambda b: b["conv"]["pw1_b"]),
        stk(lambda b: jnp.tile(b["conv"]["dw_w"], (1, n))),
        vec(lambda b: b["conv"]["dw_b"]),
        vec(lambda b: b["conv"]["bn_g"]), vec(lambda b: b["conv"]["bn_b"]),
        stk(lambda b: b["conv"]["pw2_w"]), vec(lambda b: b["conv"]["pw2_b"]),
        vec(lambda b: b["ff2"]["ln_g"]), vec(lambda b: b["ff2"]["ln_b"]),
        stk(lambda b: b["ff2"]["w1"]), vec(lambda b: b["ff2"]["b1"]),
        stk(lambda b: b["ff2"]["w2"]), vec(lambda b: b["ff2"]["b2"]),
        vec(lambda b: b["post_ln_g"]), vec(lambda b: b["post_ln_b"]),
    ]


def _pack_tsc(t0, t1):
    K, C = TSC_K, TSC_CH
    w1 = jnp.concatenate([t0["w1"][:, 0, :], t1["w1"][:, 0, :]], axis=1).T       # (2C, K)
    b1 = jnp.concatenate([t0["b1"], t1["b1"]], axis=1).T                         # (2C, 1)
    z = jnp.zeros((C, C), F32)
    w2 = jnp.concatenate(
        [jnp.concatenate(
            [jnp.concatenate([t0["w2"][k].T, z], axis=1),
             jnp.concatenate([z, t1["w2"][k].T], axis=1)], axis=0)
         for k in range(K)], axis=1)                                             # (2C, K*2C)
    b2 = jnp.concatenate([t0["b2"], t1["b2"]], axis=1).T                         # (2C, 1)
    zr = jnp.zeros((1, C), F32)
    w3 = jnp.concatenate(
        [jnp.concatenate(
            [jnp.concatenate([t0["w3"][k, 0:1, :], zr], axis=1),
             jnp.concatenate([zr, t1["w3"][k, 0:1, :]], axis=1)], axis=0)
         for k in range(K)], axis=1)                                             # (2, K*2C)
    b3 = jnp.concatenate([t0["b3"], t1["b3"]], axis=0)                           # (2, 1)
    return w1, b1, w2, b2, w3, b3


# ----------------------------- parameters ------------------------------------


def _dense(key, fan_in, fan_out):
    return (jax.random.normal(key, (fan_in, fan_out), F32) / np.sqrt(fan_in)).astype(F32)


def init_conformer_block(key):
    dim, inner, cinner = HIDDEN_DIM, INNER, CINNER
    ks = jax.random.split(key, 10)

    def ff(ka, kb):
        return dict(ln_g=jnp.ones((dim,), F32), ln_b=jnp.zeros((dim,), F32),
                    w1=_dense(ka, dim, dim * FF_MULT), b1=jnp.zeros((dim * FF_MULT,), F32),
                    w2=_dense(kb, dim * FF_MULT, dim), b2=jnp.zeros((dim,), F32))

    return dict(
        ff1=ff(ks[0], ks[1]),
        attn=dict(ln_g=jnp.ones((dim,), F32), ln_b=jnp.zeros((dim,), F32),
                  wq=_dense(ks[2], dim, inner), wkv=_dense(ks[3], dim, 2 * inner),
                  wo=_dense(ks[4], inner, dim), bo=jnp.zeros((dim,), F32)),
        conv=dict(ln_g=jnp.ones((dim,), F32), ln_b=jnp.zeros((dim,), F32),
                  pw1_w=_dense(ks[5], dim, 2 * cinner), pw1_b=jnp.zeros((2 * cinner,), F32),
                  dw_w=(jax.random.normal(ks[6], (CONV_KERNEL, cinner), F32)
                        / np.sqrt(CONV_KERNEL)).astype(F32),
                  dw_b=jnp.zeros((cinner,), F32),
                  bn_g=jnp.ones((cinner,), F32), bn_b=jnp.zeros((cinner,), F32),
                  pw2_w=_dense(ks[7], cinner, dim), pw2_b=jnp.zeros((dim,), F32)),
        ff2=ff(ks[8], ks[9]),
        post_ln_g=jnp.ones((dim,), F32), post_ln_b=jnp.zeros((dim,), F32),
    )


def _init_tsc(key):
    kk = jax.random.split(key, 3)
    return dict(
        w1=(jax.random.normal(kk[0], (TSC_K, 1, TSC_CH), F32) / np.sqrt(TSC_K)).astype(F32),
        b1=jnp.zeros((1, TSC_CH), F32),
        w2=(jax.random.normal(kk[1], (TSC_K, TSC_CH, TSC_CH), F32)
            / np.sqrt(TSC_K * TSC_CH)).astype(F32),
        b2=jnp.zeros((1, TSC_CH), F32),
        w3=(jax.random.normal(kk[2], (TSC_K, 1, TSC_CH), F32)
            / np.sqrt(TSC_K * TSC_CH)).astype(F32),
        b3=jnp.zeros((1, 1), F32),
    )


def init_params(key):
    ks = jax.random.split(key, 4)
    blocks = [init_conformer_block(k) for k in jax.random.split(ks[0], 5)]
    cls = dict(blocks=blocks,
               bn_g=jnp.ones((HIDDEN_DIM,), F32), bn_b=jnp.zeros((HIDDEN_DIM,), F32),
               w_cls=_dense(ks[1], HIDDEN_DIM, 2))
    return dict(cls=cls, t0=_init_tsc(ks[2]), t1=_init_tsc(ks[3]))


# ----------------------------- full forward ------------------------------------


def wrapped_forward(data, params, training=True, run_oracle=False, seed=0):
    # TODO(synk): use_pretrained=True path (WavLMModel from HuggingFace) is not translatable
    #             in a self-contained kernel; the default (TreatmentClassifier) path is used.
    # TODO(synk): dropout (rate 0.25, training mode) inside the ConformerBlocks is omitted.
    noisy_spec = data["treated"]                              # (N, F, T, 2)
    N = noisy_spec.shape[0]
    L = data["t_wave"].shape[-1]

    # --- iSTFT (transpose/pad glue is a few KB of XLA; the transform + OLA is in-kernel) ---
    re = jnp.transpose(noisy_spec[..., 0], (0, 2, 1))         # (N, T, F)
    im = jnp.transpose(noisy_spec[..., 1], (0, 2, 1))
    ri = jnp.concatenate(
        [jnp.pad(re, ((0, 0), (0, 0), (0, F_PAD - N_FREQS))),
         jnp.pad(im, ((0, 0), (0, 0), (0, F_PAD - N_FREQS)))], axis=-1)   # (N, T, 128)
    wave = _istft_call(N)(ri, WI_J).reshape(N, T_SPEC * HOP)

    # --- MFCC: reflect pad + chunk in XLA (tiny), framing/DFT/mel/dB/DCT in-kernel ---
    wp = jnp.pad(wave, ((0, 0), (HOP, HOP)), mode="reflect")  # (N, L + n_fft)
    chunks = wp.reshape(N, T_SPEC + 2, HOP)
    chunks = jnp.pad(chunks, ((0, 0), (0, T_PAD - (T_SPEC + 2)), (0, 0)))
    x = _mfcc_call(N)(chunks, WFULL_J, FB2_J, DCT_J).reshape(N * T_PAD, HIDDEN_DIM)

    # --- fused 5-block Conformer stack ---
    cls = params["cls"]
    rmask, kbias, pair_a, pair_b = _build_masks(N)
    stacked = _pack_conformer(cls["blocks"], N)
    x = _conformer_stack_call(N, len(cls["blocks"]))(x, rmask, kbias, *stacked)

    # --- classifier head + verbatim pair softmax + Bernoulli sample (one kernel) ---
    u = jax.random.uniform(jax.random.PRNGKey(seed), (N, T_PAD), dtype=F32)
    p0, p1, t = _head_call(N)(
        x, rmask, cls["bn_g"].reshape(1, -1), cls["bn_b"].reshape(1, -1),
        cls["w_cls"].T, pair_a, pair_b, u)
    treat = jnp.stack([p0[:, :T_FRAMES], p1[:, :T_FRAMES]], axis=1)   # (N, 2, T)

    if training or run_oracle:
        gate = data["treat_wave"].reshape(N, 1, L).astype(F32)
    else:
        # TODO(synk): torch broadcasts the (N,1,T) Bernoulli sample against the (N,1,L) wave;
        #             lengths differ in general, so the first sample column is broadcast here.
        gate = jnp.broadcast_to(t[:, :1], (N, L)).reshape(N, 1, L)

    w1, b1, w2, b2, w3, b3 = _pack_tsc(params["t0"], params["t1"])
    e = _tsc_call(N, L)(data["t_wave"].reshape(N, 1, L).astype(F32), gate,
                        w1, b1, w2, b2, w3, b3)
    return {"e_wave": e.reshape(N, L), "treat": treat}


# ----------------------------- demo ---------------------------------------------

if __name__ == "__main__":
    key = jax.random.PRNGKey(0)
    k1, k2, k3, kp = jax.random.split(key, 4)
    data = {
        "treated": jax.random.normal(k1, (N_BATCH, N_FREQS, T_SPEC, 2), F32),
        "t_wave": jax.random.normal(k2, (N_BATCH, WAVE_LEN), F32),
        "treat_wave": (jax.random.uniform(k3, (N_BATCH, 1, WAVE_LEN)) < 0.5).astype(F32),
    }
    params = init_params(kp)

    out = wrapped_forward(data, params, training=True)
    jax.block_until_ready(out["e_wave"])
    jax.block_until_ready(out["treat"])

    assert out["e_wave"].shape == (N_BATCH, WAVE_LEN)
    assert out["treat"].shape == (N_BATCH, 2, T_FRAMES)
    assert bool(jnp.all(jnp.isfinite(out["e_wave"])))
    assert bool(jnp.all(jnp.isfinite(out["treat"])))
    print("KERNEL_OK")
</pallas_src>

<mosaic_0001>
module attributes {stable_mosaic.version = 11 : i64} {
  func.func @kern(%arg0: i32, %arg1: memref<1x32x128xf32, #tpu.memory_space<vmem>>, %arg2: memref<128x64xf32, #tpu.memory_space<vmem>>, %arg3: memref<1x32x32xf32, #tpu.memory_space<vmem>>) attributes {dimension_semantics = [#tpu.dimension_semantics<parallel>], iteration_bounds = array<i64: 2>, scalar_prefetch = 0 : i64, scratch_operands = 0 : i64, tpu.core_type = #tpu.core_type<tc>, window_params = [{transform_indices = @transform_0, window_bounds = array<i64: 1, 32, 128>}, {pipeline_mode = #tpu.pipeline_mode<synchronous>, transform_indices = @transform_1, window_bounds = array<i64: 128, 64>}, {transform_indices = @transform_2, window_bounds = array<i64: 1, 32, 32>}]} {
    %c0 = arith.constant 0 : index
    %c0_0 = arith.constant 0 : index
    %c0_1 = arith.constant 0 : index
    %0 = vector.load %arg1[%c0, %c0_0, %c0_1] : memref<1x32x128xf32, #tpu.memory_space<vmem>>, vector<1x32x128xf32>
    %1 = vector.shape_cast %0 : vector<1x32x128xf32> to vector<32x128xf32>
    %c0_2 = arith.constant 0 : index
    %c0_3 = arith.constant 0 : index
    %2 = vector.load %arg2[%c0_2, %c0_3] : memref<128x64xf32, #tpu.memory_space<vmem>>, vector<128x64xf32>
    %cst = arith.constant dense<0.000000e+00> : vector<32x64xf32>
    %3 = tpu.matmul %1, %2, %cst {dimension_numbers = #tpu.dot_dimension_numbers<[1], [0], [0], [1], [0, 0, 1, 1], [], []>} : vector<32x128xf32>, vector<128x64xf32>, vector<32x64xf32> -> vector<32x64xf32>
    %4 = vector.extract_strided_slice %3 {offsets = [0, 0], sizes = [32, 32], strides = [1, 1]} : vector<32x64xf32> to vector<32x32xf32>
    %5 = vector.extract_strided_slice %3 {offsets = [0, 32], sizes = [32, 32], strides = [1, 1]} : vector<32x64xf32> to vector<32x32xf32>
    %6 = vector.extract_strided_slice %4 {offsets = [1, 0], sizes = [31, 32], strides = [1, 1]} : vector<32x32xf32> to vector<31x32xf32>
    %7 = vector.extract_strided_slice %4 {offsets = [0, 0], sizes = [1, 32], strides = [1, 1]} : vector<32x32xf32> to vector<1x32xf32>
    %8 = tpu.concatenate %6, %7 in 0 : vector<31x32xf32>, vector<1x32xf32> -> vector<32x32xf32>
    %9 = arith.addf %8, %5 : vector<32x32xf32>
    %cst_4 = arith.constant 5.000000e-01 : f32
    %10 = vector.broadcast %cst_4 : f32 to vector<32x32xf32>
    %11 = arith.mulf %10, %9 : vector<32x32xf32>
    %12 = tpu.iota {dimensions = array<i32: 0>} : vector<32x1xi32>
    %c31_i32 = arith.constant 31 : i32
    %13 = vector.broadcast %c31_i32 : i32 to vector<32x1xi32>
    %14 = arith.cmpi eq, %12, %13 : vector<32x1xi32>
    %15 = vector.shape_cast %14 : vector<32x1xi1> to vector<32x1xi1>
    %16 = vector.broadcast %15 : vector<32x1xi1> to vector<32x32xi1>
    %17 = arith.select %16, %5, %11 : vector<32x32xi1>, vector<32x32xf32>
    %c0_5 = arith.constant 0 : index
    %c0_6 = arith.constant 0 : index
    %c0_7 = arith.constant 0 : index
    %18 = vector.load %arg3[%c0_5, %c0_6, %c0_7] : memref<1x32x32xf32, #tpu.memory_space<vmem>>, vector<1x32x32xf32>
    %19 = vector.shape_cast %18 : vector<1x32x32xf32> to vector<32x32xf32>
    %20 = vector.shape_cast %17 : vector<32x32xf32> to vector<1x32x32xf32>
    tpu.vector_store %arg3[%c0_5, %c0_6, %c0_7], %20 {strides = array<i32>} : memref<1x32x32xf32, #tpu.memory_space<vmem>>, vector<1x32x32xf32>,
    return
  }
  func.func @transform_0(%arg0: i32) -> (i32, i32, i32) {
    %c0_i32 = arith.constant 0 : i32
    %c0_i32_0 = arith.constant 0 : i32
    %c0_i32_1 = arith.constant 0 : i32
    return %arg0, %c0_i32, %c0_i32_0 : i32, i32, i32
  }
  func.func @transform_1(%arg0: i32) -> (i32, i32) {
    %c0_i32 = arith.constant 0 : i32
    %c0_i32_0 = arith.constant 0 : i32
    %c0_i32_1 = arith.constant 0 : i32
    return %c0_i32, %c0_i32_0 : i32, i32
  }
  func.func @transform_2(%arg0: i32) -> (i32, i32, i32) {
    %c0_i32 = arith.constant 0 : i32
    %c0_i32_0 = arith.constant 0 : i32
    %c0_i32_1 = arith.constant 0 : i32
    return %arg0, %c0_i32, %c0_i32_0 : i32, i32, i32
  }
}

</mosaic_0001>

<bundles_post_ra>
// kernel: tpu_custom_call.1
= control target key start
LH: loop header
LB: loop body
LE: loop exit
PB: predicated region body
PF: predicated region fallthrough
CT: control target
= control target key end

     0   :  { %7 = vsyncpa [#allocation3], 0  ;;  %s810_s0 = inlined_call_operand.vmem [shape: f32[2,32,128], index: 0, kind: input, shape index: {}]   ;;  %s811_s1 = inlined_call_operand.vmem [shape: f32[128,64], index: 1, kind: input, shape index: {}]   ;;  %s812_s2 = inlined_call_operand.hbm [shape: f32[2,32,32], index: 2, kind: output, shape index: {}]  }
   0x1   :  { %9 = vsyncpa [#allocation3 + $0x1], 0  ;;  %s648_s9 = smov 0   ;;  %s650_s10 = smov 0  }
   0x2   :  { %s652_s11 = smov 0   ;;  %s654_s12 = smov 0  }
   0x3 LB: > { %s669_s13 = sadd.s32 4294967295, %s626_s12   ;;  %s419_s14 = sadd.s32 4294967294, %s626_s12   ;;  %s626_s12 = sphi %s654_s12, %s818_s12   ;;  %s622_s11 = sphi %s652_s11, %s817_s11   ;;  %s618_s10 = sphi %s650_s10, %s816_s10   ;;  %s614_s9 = sphi %s648_s9, %s815_s9  }
   0x4   : > { %s673_s15 = sadd.s32 1, %s626_s12   ;;  %s69_s16 = sadd.s32 1, %s622_s11 }
   0x5   : > { %s66_s17 = ssub.s32 %s626_s12, %s673_s15  ;;  %p79_p0 = scmp.ne.s32.totalorder %s622_s11, %s618_s10 }
   0x6   : > { %p67_p1 = scmp.eq.s32.totalorder %s66_s17, 0  ;;  %p80_p2 = scmp.eq.s32.totalorder %s669_s13, 1 }
   0x7   : > { %p85_p3 = scmp.ne.s32.totalorder %s618_s10, %s614_s9  ;;  %p86_p4 = scmp.eq.s32.totalorder %s419_s14, 1 }
   0x8   : > { %s684_s18 = scalar_select %p67_p1, %s622_s11, %s69_s16  }
   0x9   : > { %p686_p5 = por %p80_p2, %p79_p0  ;;  %p690_p6 = por %p86_p4, %p85_p3 }
   0xa   : > { %p422_p7 = scmp.ge.s32.totalorder %s626_s12, 1  ;;  %p115_p8 = scmp.lt.s32.totalorder %s626_s12, 3 }
   0xc   : > { %p116_p9 = pnand %p422_p7, %p115_p8 }
   0xd   : > { %p137_p10 = scmp.lt.s32.totalorder (!%p116_p9), %s669_s13, 1  ;;  %s628_s17 = smov (!%p116_p9), 96  }
   0xe   : > { %119 = sbr.rel (%p116_p9) target bundleno = 617 (0x269), region = 28  ;;  %s629_s21 = smov (!%p116_p9), 32  }
   0xf   : > { %s134_s22 = sand.u32 (!%p116_p9), 1, %s618_s10  }
  0x10   : > { %s423_s23 = sshll.u32 (!%p116_p9), %s134_s22, 5  ;;  %s770_s30 = scalar_lea.sflag (!%p116_p9), [#allocation3], %s134_s22 }
  0x11   : > { %s136_s24 = scalar_lea.vmem (!%p116_p9), [#allocation2], %s423_s23 }
  0x12   : > { %s357_s25 = sshll.u32 (!%p116_p9), %s136_s24, 4  ;;  %s763_s25 = int_to_ptr.vmem [resolvable:$true] %s357_s25 }
  0x13   : > { %v161_v0 = vld [vmem:[%s811_s1 + $0x78] sm:$0xff]  ;;  %v160_v1 = vld [vmem:[%s811_s1 + $0x70] sm:$0xff]  ;;  %v159_v2 = vld [vmem:[%s811_s1 + $0x68] sm:$0xff]  ;;  %s138_s26 = scalar_select %p137_p10, %s669_s13, 1  ;;  %vm251_vm0 = vcmask 1046528   ;;  %v285_v44 = vlaneseq  ;;  %vm338_vm2 = vcmask 261120  }
  0x14   : > { %453 = vmatprep.subr.mxu0 %v161_v0  ;;  %491 = vmatprep.subr.mxu1 %v161_v0  ;;  %v158_v3 = vld [vmem:[%s811_s1 + $0x60] sm:$0xff]  ;;  %v157_v4 = vld [vmem:[%s811_s1 + $0x58] sm:$0xff]  ;;  %v156_v5 = vld [vmem:[%s811_s1 + $0x50] sm:$0xff] }
  0x15   : > { %454 = vmatpush3.msra.mxu0 %v161_v0  ;;  %507 = vmatpush3.msra.mxu1 %v161_v0  ;;  %v155_v6 = vld [vmem:[%s811_s1 + $0x48] sm:$0xff]  ;;  %v154_v7 = vld [vmem:[%s811_s1 + $0x40] sm:$0xff]  ;;  %v153_v8 = vld [vmem:[%s811_s1 + $0x38] sm:$0xff]  ;;  %s431_s3 = sshll.u32 %s138_s26, 5  ;;  %v286_v45 = vshrl.u32 %v285_v44, 7  ;;  %s432_s26 = sshll.u32 %s669_s13, 9 }
  0x16   : > { %455 = vmatprep.subr.mxu0 %v160_v1  ;;  %492 = vmatprep.subr.mxu1 %v160_v1  ;;  %v152_v9 = vld [vmem:[%s811_s1 + $0x30] sm:$0xff]  ;;  %v151_v10 = vld [vmem:[%s811_s1 + $0x28] sm:$0xff]  ;;  %v150_v11 = vld [vmem:[%s811_s1 + $0x20] sm:$0xff]  ;;  %s141_s8 = scalar_lea.vmem %s810_s0, %s431_s3  ;;  %s768_s29 = scalar_lea.hbm %s812_s2, %s432_s26 }
  0x17   : > { %456 = vmatpush3.msra.mxu0 %v160_v1  ;;  %508 = vmatpush3.msra.mxu1 %v160_v1  ;;  %v149_v12 = vld [vmem:[%s811_s1 + $0x18] sm:$0xff]  ;;  %v148_v13 = vld [vmem:[%s811_s1 + $0x10] sm:$0xff]  ;;  %v147_v14 = vld [vmem:[%s811_s1 + $0x8] sm:$0xff]  ;;  %v289_v47 = vadd.s32 24, %v286_v45  ;;  %s566_s3 = scalar_lea.vmem %s763_s25, 512  ;;  %s630_s13 = smov [#allocation2]  }
  0x18   : > { %457 = vmatprep.subr.mxu0 %v159_v2  ;;  %493 = vmatprep.subr.mxu1 %v159_v2  ;;  %v146_v15 = vld [vmem:[%s811_s1] sm:$0xff]  ;;  %v144_v17 = vld [vmem:[%s141_s8 + $0x10] sm:$0xff]  ;;  %v143_v18 = vld [vmem:[%s141_s8 + $0x8] sm:$0xff]  ;;  %p567_p11 = scmp.ne.s32.totalorder %s763_s25, %s566_s3  ;;  %s570_s4 = sshll.u32 %s630_s13, 4  ;;  %s571_s4 = int_to_ptr.vmem [resolvable:$false] %s570_s4 }
  0x19   : > { %458 = vmatpush3.msra.mxu0 %v159_v2  ;;  %509 = vmatpush3.msra.mxu1 %v159_v2  ;;  %v142_v16 = vld [vmem:[%s141_s8] sm:$0xff]  ;;  %v145_v19 = vld [vmem:[%s141_s8 + $0x18] sm:$0xff]  ;;  %vm293_vm1 = vcmp.eq.s32.totalorder %v289_v47, 31  ;;  %s572_s5 = scalar_lea.vmem %s571_s4, 1024  ;;  %p573_p0 = scmp.lt.s32.totalorder %s763_s25, %s571_s4 }
  0x1a   : > { %459 = vmatprep.subr.mxu0 %v158_v3  ;;  %494 = vmatprep.subr.mxu1 %v158_v3  ;;  %p568_p12 = pnand %p567_p11, %p686_p5  ;;  %p574_p1 = scmp.lt.s32.totalorder %s572_s5, %s566_s3 }
  0x1b   : > { %460 = vmatpush3.msra.mxu0 %v158_v3  ;;  %510 = vmatpush3.msra.mxu1 %v158_v3 }
  0x1c   : > { %461 = vmatprep.subr.mxu0 %v157_v4  ;;  %495 = vmatprep.subr.mxu1 %v157_v4  ;;  %p569_p13 = pneg %p568_p12  ;;  %p575_p2 = por %p574_p1, %p573_p0 }
  0x1d   : > { %462 = vmatpush3.msra.mxu0 %v157_v4  ;;  %511 = vmatpush3.msra.mxu1 %v157_v4 }
  0x1e   : > { %463 = vmatprep.subr.mxu0 %v156_v5  ;;  %496 = vmatprep.subr.mxu1 %v156_v5  ;;  %p576_p3 = pnand %p575_p2, %p569_p13 }
  0x1f   : > { %464 = vmatpush3.msra.mxu0 %v156_v5  ;;  %512 = vmatpush3.msra.mxu1 %v156_v5 }
  0x20   : > { %465 = vmatprep.subr.mxu0 %v155_v6  ;;  %497 = vmatprep.subr.mxu1 %v155_v6 }
  0x21   : > { %466 = vmatpush3.msra.mxu0 %v155_v6  ;;  %513 = vmatpush3.msra.mxu1 %v155_v6 }
  0x22   : > { %467 = vmatprep.subr.mxu0 %v154_v7  ;;  %498 = vmatprep.subr.mxu1 %v154_v7 }
  0x23   : > { %468 = vmatpush3.msra.mxu0 %v154_v7  ;;  %514 = vmatpush3.msra.mxu1 %v154_v7 }
  0x24   : > { %469 = vmatprep.subr.mxu0 %v153_v8  ;;  %499 = vmatprep.subr.mxu1 %v153_v8 }
  0x25   : > { %470 = vmatpush3.msra.mxu0 %v153_v8  ;;  %515 = vmatpush3.msra.mxu1 %v153_v8 }
  0x26   : > { %471 = vmatprep.subr.mxu0 %v152_v9  ;;  %500 = vmatprep.subr.mxu1 %v152_v9 }
  0x27   : > { %472 = vmatpush3.msra.mxu0 %v152_v9  ;;  %516 = vmatpush3.msra.mxu1 %v152_v9 }
  0x28   : > { %473 = vmatprep.subr.mxu0 %v151_v10  ;;  %501 = vmatprep.subr.mxu1 %v151_v10 }
  0x29   : > { %474 = vmatpush3.msra.mxu0 %v151_v10  ;;  %517 = vmatpush3.msra.mxu1 %v151_v10 }
  0x2a   : > { %475 = vmatprep.subr.mxu0 %v150_v11  ;;  %502 = vmatprep.subr.mxu1 %v150_v11 }
  0x2b   : > { %476 = vmatpush3.msra.mxu0 %v150_v11  ;;  %518 = vmatpush3.msra.mxu1 %v150_v11 }
  0x2c   : > { %477 = vmatprep.subr.mxu0 %v149_v12  ;;  %503 = vmatprep.subr.mxu1 %v149_v12 }
  0x2d   : > { %478 = vmatpush3.msra.mxu0 %v149_v12  ;;  %519 = vmatpush3.msra.mxu1 %v149_v12 }
  0x2e   : > { %479 = vmatprep.subr.mxu0 %v148_v13  ;;  %504 = vmatprep.subr.mxu1 %v148_v13 }
  0x2f   : > { %480 = vmatpush3.msra.mxu0 %v148_v13  ;;  %520 = vmatpush3.msra.mxu1 %v148_v13 }
  0x30   : > { %481 = vmatprep.subr.mxu0 %v147_v14  ;;  %505 = vmatprep.subr.mxu1 %v147_v14 }
  0x31   : > { %482 = vmatpush3.msra.mxu0 %v147_v14  ;;  %521 = vmatpush3.msra.mxu1 %v147_v14 }
  0x32   : > { %483 = vmatprep.subr.mxu0 %v146_v15  ;;  %506 = vmatprep.subr.mxu1 %v146_v15 }
  0x33   : > { %484 = vmatpush3.msra.mxu0 %v146_v15  ;;  %522 = vmatpush3.msra.mxu1 %v146_v15 }
  0x34   : > { %485 = vmatprep.mubr.f32.mxu0 %v142_v16  ;;  %488 = vmatprep.mubr.f32.mxu1 %v144_v17 }
  0x35   : > { %486 = vmatmul.mubr.f32.vlgmr.msra.gmra.mxu0 %v143_v18  ;;  %489 = vmatmul.mubr.f32.vlgmr.msra.gmra.mxu1 %v145_v19 }
  0xf5   : > { %v487_v20 = vpop.f32.mrf.mxu0  ;;  %v490_v21 = vpop.f32.mrf.mxu1 }
  0xf6   : > { %v253_v22 = vrot.slane %v487_v20, 1  ;;  %271 = vrot.lane.b32.xlu0 %v490_v21, %s628_s17  ;;  %267 = vrot.lane.b32.xlu1 %v487_v20, %s628_s17  ;;  %v257_v29 = vrot.slane %v490_v21, 1 }
  0xf7   : > { %v228_v23 = vpop.f32.mrf.mxu0  ;;  %v238_v24 = vpop.f32.mrf.mxu1 }
  0xf8   : > { %v252_v25 = vrot.slane %v228_v23, 1  ;;  %v255_v26 = vrot.slane %v238_v24, 1 }
  0xfa   : > { %269 = vrot.lane.b32.xlu1 %v238_v24, %s628_s17  ;;  %265 = vrot.lane.b32.xlu0 %v228_v23, %s628_s17  ;;  %v256_v27 = vsel %vm251_vm0, %v253_v22, %v255_v26  ;;  %v254_v28 = vsel %vm251_vm0, %v252_v25, %v253_v22  ;;  %v264_v31 = vsel %vm251_vm0, %v257_v29, %v252_v25 }
  0xfb   : > { %v258_v39 = vsel %vm251_vm0, %v255_v26, %v257_v29 }
 0x168   : > { %v272_v30 = vpop.permute.xlu0 %271  ;;  %v268_v32 = vpop.permute.xlu1 %267 }
 0x169   : > { %v280_v33 = vadd.f32 %v272_v30, %v264_v31  ;;  %v278_v35 = vadd.f32 %v268_v32, %v256_v27 }
 0x16b   : > { %v284_v34 = vmul.f32 0.5, %v280_v33  ;;  %v282_v40 = vmul.f32 0.5, %v278_v35 }
 0x16c   : > { %v270_v36 = vpop.permute.xlu1 %269  ;;  %v266_v37 = vpop.permute.xlu0 %265 }
 0x16d   : > { %v277_v38 = vadd.f32 %v266_v37, %v254_v28  ;;  %312 = vrot.lane.b32.xlu0 %v284_v34, %s629_s21  ;;  %v279_v41 = vadd.f32 %v270_v36, %v258_v39 }
 0x16f   : > { %v281_v42 = vmul.f32 0.5, %v277_v38  ;;  %v283_v43 = vmul.f32 0.5, %v279_v41 }
 0x171   : > { %308 = vrot.lane.b32.xlu0 %v282_v40, %s629_s21  ;;  %306 = vrot.lane.b32.xlu1 %v281_v42, %s629_s21 }
 0x175   : > { %310 = vrot.lane.b32.xlu1 %v283_v43, %s629_s21 }
 0x1df   : > { %v313_v46 = vpop.permute.xlu0 %312 }
 0x1e0   : > { %v321_v51 = vsel %vm293_vm1, %v490_v21, %v313_v46 }
 0x1e3   : > { %v309_v48 = vpop.permute.xlu0 %308  ;;  %v307_v49 = vpop.permute.xlu1 %306 }
 0x1e4   : > { %328 = vrot.lane.b32.xlu1 %v309_v48, %s628_s17  ;;  %326 = vrot.lane.b32.xlu0 %v307_v49, %s628_s17 }
 0x1e7   : > { %v311_v50 = vpop.permute.xlu1 %310 }
 0x1e8   : > { %332 = vrot.lane.b32.xlu1 %v321_v51, %s628_s17  ;;  %330 = vrot.lane.b32.xlu0 %v311_v50, %s628_s17 }
 0x256   : > { %v327_v52 = vpop.permute.xlu0 %326  ;;  %v329_v53 = vpop.permute.xlu1 %328 }
 0x257   : > { %339 = vst.msk [vmem:[%s136_s24] sm:$0xff] %vm338_vm2, %v327_v52  ;;  %340 = vst.msk [vmem:[%s136_s24 + $0x8] sm:$0xff] %vm338_vm2, %v329_v53 }
 0x25a   : > { %v331_v54 = vpop.permute.xlu0 %330  ;;  %v333_v55 = vpop.permute.xlu1 %332 }
 0x25b   : > { %341 = vst.msk [vmem:[%s136_s24 + $0x10] sm:$0xff] %vm338_vm2, %v331_v54  ;;  %342 = vst.msk [vmem:[%s136_s24 + $0x18] sm:$0xff] %vm338_vm2, %v333_v55 }
 0x25c   : > { %579 = shalt.err (!%p576_p3)
}
 0x25d   : > { %s580_s6 = scalar_lea.hbm %s768_s29, 512  ;;  %s584_s14 = scalar_lea.hbm %s812_s2, 1024 }
 0x25e   : > { %p581_p4 = scmp.ne.s32.totalorder %s768_s29, %s580_s6  ;;  %p585_p9 = scmp.lt.s32.totalorder %s768_s29, %s812_s2 }
 0x25f   : > { %p586_p10 = scmp.lt.s32.totalorder %s584_s14, %s580_s6 }
 0x260   : > { %p582_p7 = pnand %p581_p4, %p686_p5 }
 0x261   : > { %p587_p11 = por %p586_p10, %p585_p9 }
 0x262   : > { %p583_p8 = pneg %p582_p7 }
 0x264   : > { %p588_p12 = pnand %p587_p11, %p583_p8 }
 0x266   : > { %591 = shalt.err (!%p588_p12)
}
 0x267   : > { %s631_s21 = smov 128   ;;  %s632_s22 = smov 8  }
 0x268   : > { %523 = dma.vmem_to_hbm [thread:$0]  (%p686_p5), %s763_s25, 512, %s768_s29, %s770_s30, %s631_s21, %s631_s21, %s632_s22  }
 0x269 PF: > { %p529_p13 = scmp.ge.s32.totalorder %s626_s12, 2  ;;  %s372_s23 = sand.u32 1, %s614_s9  }
 0x26a   : > { %s373_s24 = scalar_lea.sflag [#allocation3], %s372_s23 }
 0x26b   : > { %p526_p0 = pnand %p529_p13, %p690_p6 }
 0x26d   : > { %p527_p1 = pneg %p526_p0 }
 0x26f   : > { %609 = dma.done.wait (%p527_p1), %s373_s24, 512  }
 0x270   : > { %611 = vsyncadd (%p527_p1), %s373_s24, 4294966784  ;;  %p12_p2 = scmp.ge.s32.totalorder %s673_s15, 4   ;;  %s815_s9 = smov %s618_s10 }
 0x271   : > { %s816_s10 = smov %s622_s11  ;;  %s817_s11 = smov %s684_s18 }
 0x272   : > { %s818_s12 = smov %s673_s15  ;;  %14 = sbr.rel (!%p12_p2) target bundleno = 3 (0x3), region = 63 }
 0x277   :  { %378 = vsyncpa [#allocation3], 1 }
 0x278   :  { %380 = vsyncpa [#allocation3 + $0x1], 1 }

</bundles_post_ra>
